<compile_context>
chip_gen: v6e
topology: v6e:2x2x1
jax: 0.10.0
libtpu: 0.0.40
codegen_flags: <defaults>
</compile_context>

<pallas_src>
import jax
import jax.numpy as jnp
from jax.experimental import pallas as pl
from jax.experimental.pallas import tpu as pltpu


def _size_copy_kernel(size_ref, out_ref):
    # Single scalar SMEM load + store; the size arrives as data, so this
    # kernel compiles exactly once and is reused for all sizes.
    out_ref[0] = size_ref[0]


# One parameterized kernel for all sizes: (1,) int32 SMEM in -> (1,) int32 SMEM out.
_size_pallas = jax.jit(
    pl.pallas_call(
        _size_copy_kernel,
        out_shape=jax.ShapeDtypeStruct((1,), jnp.int32),
        in_specs=[pl.BlockSpec(memory_space=pltpu.SMEM)],
        out_specs=pl.BlockSpec(memory_space=pltpu.SMEM),
    )
)


def _normalize_dim(ndim: int, dimension: int) -> int:
    """PyTorch-style dim handling: negative dims allowed, out-of-range raises."""
    if not (-ndim <= dimension < ndim):
        raise IndexError(
            f"Dimension out of range (expected to be in range of "
            f"[{-ndim}, {ndim - 1}], but got {dimension})"
        )
    return dimension % ndim


def simple_size_model_fast(tensor: jax.Array, dimension: int) -> int:
    """Optimal path: tensor.size(d) resolved at trace time (no kernel, 0 ns).

    This matches PyTorch semantics most closely — .size(d) is a Python int
    usable directly in control flow / index math / shape positions.
    """
    return tensor.shape[_normalize_dim(tensor.ndim, dimension)]


def simple_size_model(tensor: jax.Array, dimension: int) -> jax.Array:
    """Pallas implementation of SimpleSizeModel.forward.

    Returns a (1,) int32 device array whose single element equals
    tensor.shape[dimension].  The tensor itself is never bound as a kernel
    operand (only its static shape is consulted), so there is no DMA, no
    false scheduling dependency on the tensor's producer, and no recompile
    when the shape changes — the size travels as SMEM scalar data.
    """
    size_value = tensor.shape[_normalize_dim(tensor.ndim, dimension)]
    return _size_pallas(jnp.asarray([size_value], dtype=jnp.int32))


if __name__ == "__main__":
    key = jax.random.PRNGKey(0)
    # NCHW input, small shape consistent with the torch_glow test style.
    x = jax.random.normal(key, (2, 4, 16, 16), dtype=jnp.float32)

    dimension = 1  # the module is constructed with a fixed dimension

    # --- Pallas kernel path -------------------------------------------------
    size_arr = jax.block_until_ready(simple_size_model(x, dimension))
    assert size_arr.shape == (1,) and size_arr.dtype == jnp.int32
    assert int(size_arr[0]) == x.shape[dimension], (int(size_arr[0]), x.shape[dimension])

    # Negative dimension (reuses the SAME compiled kernel — size is data).
    size_neg = jax.block_until_ready(simple_size_model(x, -1))
    assert int(size_neg[0]) == x.shape[-1], (int(size_neg[0]), x.shape[-1])

    # A different tensor rank/shape also reuses the same compiled kernel.
    y = jax.random.normal(key, (2, 8, 32), dtype=jnp.float32)
    size_y = jax.block_until_ready(simple_size_model(y, 2))
    assert int(size_y[0]) == y.shape[2], (int(size_y[0]), y.shape[2])

    # --- Trace-time fast path (preferred in real code) ----------------------
    assert simple_size_model_fast(x, dimension) == x.shape[dimension]
    assert simple_size_model_fast(x, -1) == x.shape[-1]

    # --- PyTorch-fidelity: out-of-range dim raises IndexError ---------------
    try:
        simple_size_model_fast(x, 5)
    except IndexError:
        pass
    else:
        raise AssertionError("expected IndexError for out-of-range dimension")

    print("KERNEL_OK")
</pallas_src>

<mosaic_0001>
module attributes {stable_mosaic.version = 11 : i64} {
  func.func @_size_copy_kernel(%arg0: memref<1xi32, #tpu.memory_space<smem>>, %arg1: memref<1xi32, #tpu.memory_space<smem>>) attributes {dimension_semantics = [], scalar_prefetch = 0 : i64, scratch_operands = 0 : i64, tpu.core_type = #tpu.core_type<tc>} {
    %c0 = arith.constant 0 : index
    %0 = memref.load %arg0[%c0] : memref<1xi32, #tpu.memory_space<smem>>
    %c0_0 = arith.constant 0 : index
    %1 = memref.load %arg1[%c0_0] : memref<1xi32, #tpu.memory_space<smem>>
    memref.store %0, %arg1[%c0_0] : memref<1xi32, #tpu.memory_space<smem>>
    return
  }
}

</mosaic_0001>

<bundles_post_ra>
// kernel: tpu_custom_call.1
= control target key start
LH: loop header
LB: loop body
LE: loop exit
PB: predicated region body
PF: predicated region fallthrough
CT: control target
= control target key end

     0   :  { %7 = vsyncpa [#allocation4], 0  ;;  %s37_s8 = smov [#allocation3]   ;;  %s54_s0 = inlined_call_operand.<no memory space> [shape: s32[1], index: 0, kind: input, shape index: {}]   ;;  %s55_s1 = inlined_call_operand.hbm [shape: s32[1], index: 1, kind: output, shape index: {}]  }
   0x1   :  { %12 = sst [smem:[#allocation3]] %s54_s0 }
   0x2   :  { %20 = dma.smem_to_hbm %s37_s8, 16, %s55_s1, [#allocation4]  }
   0x3   :  { %35 = dma.done.wait [#allocation4], 16  }
   0x4   :  { %36 = vsyncadd [#allocation4], 4294967280 }
   0x5   :  { %24 = sfence }
   0x6   :  { %25 = vsyncpa [#allocation4], 1 }

</bundles_post_ra>
